<compile_context>
chip_gen: v6e
topology: v6e:2x2x1
jax: 0.10.0
libtpu: 0.0.40
codegen_flags: <defaults>
</compile_context>

<pallas_src>
import functools

import jax
import jax.numpy as jnp
from jax import lax
from jax.experimental import pallas as pl
from jax.experimental.pallas import tpu as pltpu

EPS = 1e-5  # nn.LayerNorm default


def _layernorm_linear(x_ref, gamma_ref, beta_ref, w_ref, b_ref):
    """LayerNorm over the last axis, then Linear(dim, dim) on the MXU."""
    x = x_ref[...].astype(jnp.float32)                       # (TM, D)
    mu = jnp.mean(x, axis=-1, keepdims=True)                 # (TM, 1)
    xc = x - mu
    var = jnp.mean(xc * xc, axis=-1, keepdims=True)          # (TM, 1)
    inv = lax.rsqrt(var + EPS)
    xn = xc * inv * gamma_ref[...] + beta_ref[...]            # (TM, D) f32
    # bf16 MXU inputs, f32 accumulation (W is already stored as bf16).
    y = jnp.dot(xn.astype(jnp.bfloat16), w_ref[...],
                preferred_element_type=jnp.float32)
    return y + b_ref[...]                                     # broadcast (1, D)


def _kernel_train(x_ref, gamma_ref, beta_ref, w_ref, b_ref, bits_ref, o_ref,
                  *, keep_threshold, inv_keep):
    y = _layernorm_linear(x_ref, gamma_ref, beta_ref, w_ref, b_ref)
    # Integer-threshold dropout: keep w.p. (1 - p), scale kept values by 1/(1-p).
    keep = bits_ref[...] >= jnp.uint32(keep_threshold)
    o_ref[...] = jnp.where(keep, y * inv_keep, 0.0).astype(o_ref.dtype)


def _kernel_eval(x_ref, gamma_ref, beta_ref, w_ref, b_ref, o_ref):
    y = _layernorm_linear(x_ref, gamma_ref, beta_ref, w_ref, b_ref)
    o_ref[...] = y.astype(o_ref.dtype)


def pre_norm_drop(x, gamma, beta, w, b, *, dropout_rate, rng_key=None,
                  block_rows=512):
    """x: (B, S, D). Returns dropout(layernorm(x) @ w + b), shape (B, S, D)."""
    B, S, D = x.shape
    N = B * S
    x2 = x.reshape(N, D)
    gamma2 = gamma.reshape(1, D).astype(jnp.float32)
    beta2 = beta.reshape(1, D).astype(jnp.float32)
    b2 = b.reshape(1, D).astype(jnp.float32)
    w_bf16 = w.astype(jnp.bfloat16)      # halves resident VMEM + HBM traffic

    tm = N if N <= block_rows else block_rows
    grid = (pl.cdiv(N, tm),)

    row_spec = pl.BlockSpec((tm, D), lambda i: (i, 0))        # tiled x / bits / out
    const2 = lambda i: (0, 0)                                 # resident params
    param_specs = [
        pl.BlockSpec((1, D), const2),   # gamma
        pl.BlockSpec((1, D), const2),   # beta
        pl.BlockSpec((D, D), const2),   # W (resident, bf16)
        pl.BlockSpec((1, D), const2),   # b
    ]
    compiler_params = pltpu.CompilerParams(
        dimension_semantics=("parallel",))   # rows independent -> 2 TCs on v7x

    if dropout_rate > 0.0:
        if rng_key is None:
            raise ValueError("rng_key is required when dropout_rate > 0")
        # TODO(synk): on hardware, in-kernel pltpu.prng_seed/prng_random_bits
        # (seeded per-tile with pl.program_id) would avoid this extra (N, D)
        # uint32 HBM read, but it has no interpret-mode lowering.
        bits = jax.random.bits(rng_key, (N, D), dtype=jnp.uint32)
        keep_threshold = min(int(round(float(dropout_rate) * (1 << 32))),
                             (1 << 32) - 1)
        inv_keep = 1.0 / (1.0 - float(dropout_rate))
        kernel = functools.partial(_kernel_train,
                                   keep_threshold=keep_threshold,
                                   inv_keep=inv_keep)
        out = pl.pallas_call(
            kernel,
            out_shape=jax.ShapeDtypeStruct((N, D), x.dtype),
            grid=grid,
            in_specs=[row_spec] + param_specs + [row_spec],
            out_specs=row_spec,
            compiler_params=compiler_params,
        )(x2, gamma2, beta2, w_bf16, b2, bits)
    else:
        out = pl.pallas_call(
            _kernel_eval,
            out_shape=jax.ShapeDtypeStruct((N, D), x.dtype),
            grid=grid,
            in_specs=[row_spec] + param_specs,
            out_specs=row_spec,
            compiler_params=compiler_params,
        )(x2, gamma2, beta2, w_bf16, b2)

    return out.reshape(B, S, D)


def _reference_no_dropout(x, gamma, beta, w, b):
    mu = jnp.mean(x, axis=-1, keepdims=True)
    var = jnp.mean((x - mu) ** 2, axis=-1, keepdims=True)
    xn = (x - mu) * lax.rsqrt(var + EPS) * gamma + beta
    return jnp.einsum("bsd,de->bse", xn, w) + b


if __name__ == "__main__":
    key = jax.random.PRNGKey(0)
    k_x, k_w, k_b, k_drop = jax.random.split(key, 4)

    B, S, D = 2, 8, 128          # batch=2, seq=8, hidden(dim)=128 (lane-dense)
    dropout_rate = 0.1

    x = jax.random.normal(k_x, (B, S, D), dtype=jnp.float32)
    gamma = jnp.ones((D,), dtype=jnp.float32)     # nn.LayerNorm default init
    beta = jnp.zeros((D,), dtype=jnp.float32)
    w = jax.random.normal(k_w, (D, D), dtype=jnp.float32) * (1.0 / D ** 0.5)
    b = jax.random.normal(k_b, (D,), dtype=jnp.float32) * 0.01

    # small block_rows so the demo exercises a multi-step (grid > 1) pipeline
    blk = 8

    # 1) Deterministic path (dropout disabled) vs pure-JAX reference.
    out_nodrop = pre_norm_drop(x, gamma, beta, w, b,
                               dropout_rate=0.0, block_rows=blk)
    ref = _reference_no_dropout(x, gamma, beta, w, b)
    assert jnp.allclose(out_nodrop, ref, atol=5e-2, rtol=5e-2), \
        "no-dropout output mismatch (bf16 matmul tolerance)"

    # 2) Training path with dropout active.
    out = pre_norm_drop(x, gamma, beta, w, b,
                        dropout_rate=dropout_rate, rng_key=k_drop,
                        block_rows=blk)
    jax.block_until_ready(out)
    assert out.shape == (B, S, D)

    # Sanity: roughly `dropout_rate` of elements are zeroed ...
    drop_frac = float(jnp.mean(out == 0.0))
    assert 0.01 < drop_frac < 0.3, f"unexpected drop fraction {drop_frac}"
    # ... and kept elements equal the reference scaled by 1/(1-p).
    kept = out != 0.0
    rescaled = jnp.where(kept, out * (1.0 - dropout_rate), 0.0)
    ref_masked = jnp.where(kept, ref, 0.0)
    assert jnp.allclose(rescaled, ref_masked, atol=5e-2, rtol=5e-2)

    print("KERNEL_OK")
</pallas_src>

<mosaic_0001>
module attributes {stable_mosaic.version = 11 : i64} {
  func.func @_kernel_eval(%arg0: i32, %arg1: memref<8x128xf32, #tpu.memory_space<vmem>>, %arg2: memref<1x128xf32, #tpu.memory_space<vmem>>, %arg3: memref<1x128xf32, #tpu.memory_space<vmem>>, %arg4: memref<128x128xbf16, #tpu.memory_space<vmem>>, %arg5: memref<1x128xf32, #tpu.memory_space<vmem>>, %arg6: memref<8x128xf32, #tpu.memory_space<vmem>>) attributes {dimension_semantics = [#tpu.dimension_semantics<parallel>], iteration_bounds = array<i64: 2>, scalar_prefetch = 0 : i64, scratch_operands = 0 : i64, tpu.core_type = #tpu.core_type<tc>, window_params = [{transform_indices = @transform_0, window_bounds = array<i64: 8, 128>}, {pipeline_mode = #tpu.pipeline_mode<synchronous>, transform_indices = @transform_1, window_bounds = array<i64: 1, 128>}, {pipeline_mode = #tpu.pipeline_mode<synchronous>, transform_indices = @transform_2, window_bounds = array<i64: 1, 128>}, {pipeline_mode = #tpu.pipeline_mode<synchronous>, transform_indices = @transform_3, window_bounds = array<i64: 128, 128>}, {pipeline_mode = #tpu.pipeline_mode<synchronous>, transform_indices = @transform_4, window_bounds = array<i64: 1, 128>}, {transform_indices = @transform_5, window_bounds = array<i64: 8, 128>}]} {
    %c0 = arith.constant 0 : index
    %c0_0 = arith.constant 0 : index
    %0 = vector.load %arg1[%c0, %c0_0] : memref<8x128xf32, #tpu.memory_space<vmem>>, vector<8x128xf32>
    %cst = arith.constant dense<0.000000e+00> : vector<8xf32>
    %1 = vector.multi_reduction <add>, %0, %cst [1] : vector<8x128xf32> to vector<8xf32>
    %2 = vector.shape_cast %1 : vector<8xf32> to vector<8x1xf32>
    %cst_1 = arith.constant 1.280000e+02 : f32
    %3 = vector.broadcast %cst_1 : f32 to vector<8x1xf32>
    %4 = arith.divf %2, %3 : vector<8x1xf32>
    %5 = vector.broadcast %4 : vector<8x1xf32> to vector<8x128xf32>
    %6 = arith.subf %0, %5 : vector<8x128xf32>
    %7 = arith.mulf %6, %6 : vector<8x128xf32>
    %cst_2 = arith.constant dense<0.000000e+00> : vector<8xf32>
    %8 = vector.multi_reduction <add>, %7, %cst_2 [1] : vector<8x128xf32> to vector<8xf32>
    %9 = vector.shape_cast %8 : vector<8xf32> to vector<8x1xf32>
    %cst_3 = arith.constant 1.280000e+02 : f32
    %10 = vector.broadcast %cst_3 : f32 to vector<8x1xf32>
    %11 = arith.divf %9, %10 : vector<8x1xf32>
    %cst_4 = arith.constant 9.99999974E-6 : f32
    %12 = vector.broadcast %cst_4 : f32 to vector<8x1xf32>
    %13 = arith.addf %11, %12 : vector<8x1xf32>
    %14 = math.rsqrt %13 : vector<8x1xf32>
    %15 = vector.broadcast %14 : vector<8x1xf32> to vector<8x128xf32>
    %16 = arith.mulf %6, %15 : vector<8x128xf32>
    %c0_5 = arith.constant 0 : index
    %c0_6 = arith.constant 0 : index
    %17 = vector.load %arg2[%c0_5, %c0_6] : memref<1x128xf32, #tpu.memory_space<vmem>>, vector<1x128xf32>
    %18 = vector.broadcast %17 : vector<1x128xf32> to vector<8x128xf32>
    %19 = arith.mulf %16, %18 : vector<8x128xf32>
    %c0_7 = arith.constant 0 : index
    %c0_8 = arith.constant 0 : index
    %20 = vector.load %arg3[%c0_7, %c0_8] : memref<1x128xf32, #tpu.memory_space<vmem>>, vector<1x128xf32>
    %21 = vector.broadcast %20 : vector<1x128xf32> to vector<8x128xf32>
    %22 = arith.addf %19, %21 : vector<8x128xf32>
    %23 = arith.truncf %22 : vector<8x128xf32> to vector<8x128xbf16>
    %c0_9 = arith.constant 0 : index
    %c0_10 = arith.constant 0 : index
    %24 = vector.load %arg4[%c0_9, %c0_10] : memref<128x128xbf16, #tpu.memory_space<vmem>>, vector<128x128xbf16>
    %cst_11 = arith.constant dense<0.000000e+00> : vector<8x128xf32>
    %25 = tpu.matmul %23, %24, %cst_11 {dimension_numbers = #tpu.dot_dimension_numbers<[1], [0], [0], [1], [0, 0, 1, 1], [], []>} : vector<8x128xbf16>, vector<128x128xbf16>, vector<8x128xf32> -> vector<8x128xf32>
    %c0_12 = arith.constant 0 : index
    %c0_13 = arith.constant 0 : index
    %26 = vector.load %arg5[%c0_12, %c0_13] : memref<1x128xf32, #tpu.memory_space<vmem>>, vector<1x128xf32>
    %27 = vector.broadcast %26 : vector<1x128xf32> to vector<8x128xf32>
    %28 = arith.addf %25, %27 : vector<8x128xf32>
    %c0_14 = arith.constant 0 : index
    %c0_15 = arith.constant 0 : index
    %29 = vector.load %arg6[%c0_14, %c0_15] : memref<8x128xf32, #tpu.memory_space<vmem>>, vector<8x128xf32>
    tpu.vector_store %arg6[%c0_14, %c0_15], %28 {strides = array<i32>} : memref<8x128xf32, #tpu.memory_space<vmem>>, vector<8x128xf32>,
    return
  }
  func.func @transform_0(%arg0: i32) -> (i32, i32) {
    %c0_i32 = arith.constant 0 : i32
    %c0_i32_0 = arith.constant 0 : i32
    return %arg0, %c0_i32 : i32, i32
  }
  func.func @transform_1(%arg0: i32) -> (i32, i32) {
    %c0_i32 = arith.constant 0 : i32
    %c0_i32_0 = arith.constant 0 : i32
    %c0_i32_1 = arith.constant 0 : i32
    return %c0_i32, %c0_i32_0 : i32, i32
  }
  func.func @transform_2(%arg0: i32) -> (i32, i32) {
    %c0_i32 = arith.constant 0 : i32
    %c0_i32_0 = arith.constant 0 : i32
    %c0_i32_1 = arith.constant 0 : i32
    return %c0_i32, %c0_i32_0 : i32, i32
  }
  func.func @transform_3(%arg0: i32) -> (i32, i32) {
    %c0_i32 = arith.constant 0 : i32
    %c0_i32_0 = arith.constant 0 : i32
    %c0_i32_1 = arith.constant 0 : i32
    return %c0_i32, %c0_i32_0 : i32, i32
  }
  func.func @transform_4(%arg0: i32) -> (i32, i32) {
    %c0_i32 = arith.constant 0 : i32
    %c0_i32_0 = arith.constant 0 : i32
    %c0_i32_1 = arith.constant 0 : i32
    return %c0_i32, %c0_i32_0 : i32, i32
  }
  func.func @transform_5(%arg0: i32) -> (i32, i32) {
    %c0_i32 = arith.constant 0 : i32
    %c0_i32_0 = arith.constant 0 : i32
    return %arg0, %c0_i32 : i32, i32
  }
}

</mosaic_0001>

<bundles_post_ra>
// kernel: tpu_custom_call.1
= control target key start
LH: loop header
LB: loop body
LE: loop exit
PB: predicated region body
PF: predicated region fallthrough
CT: control target
= control target key end

     0   :  { %10 = vsyncpa [#allocation3], 0  ;;  %s957_s0 = inlined_call_operand.hbm [shape: f32[16,128], index: 0, kind: input, shape index: {}]   ;;  %s958_s1 = inlined_call_operand.vmem [shape: f32[1,128], index: 1, kind: input, shape index: {}]   ;;  %s959_s2 = inlined_call_operand.vmem [shape: f32[1,128], index: 2, kind: input, shape index: {}]   ;;  %s960_s3 = inlined_call_operand.hbm [shape: bf16[128,128], index: 3, kind: input, shape index: {}]   ;;  %s961_s4 = inlined_call_operand.vmem [shape: f32[1,128], index: 4, kind: input, shape index: {}]   ;;  %s962_s5 = inlined_call_operand.hbm [shape: f32[16,128], index: 5, kind: output, shape index: {}]  }
   0x1   :  { %12 = vsyncpa [#allocation3 + $0x1], 0 }
   0x2   :  { %13 = vsyncpa [#allocation6], 0 }
   0x3   :  { %14 = vsyncpa [#allocation4], 0 }
   0x4   :  { %16 = vsyncpa [#allocation4 + $0x1], 0  ;;  %s778_s18 = smov 0   ;;  %s780_s19 = smov 0  }
   0x5   :  { %s782_s20 = smov 0   ;;  %s784_s21 = smov 0  }
   0x6 LB: > { %s799_s22 = sadd.s32 4294967295, %s739_s21   ;;  %s492_s23 = sadd.s32 4294967294, %s739_s21   ;;  %s739_s21 = sphi %s784_s21, %s984_s21   ;;  %s735_s20 = sphi %s782_s20, %s983_s20   ;;  %s731_s19 = sphi %s780_s19, %s982_s19   ;;  %s727_s18 = sphi %s778_s18, %s981_s18  }
   0x7   : > { %p42_p0 = scmp.ne.s32.totalorder %s731_s19, %s727_s18  ;;  %p963_p1 = scmp.eq.s32.totalorder %s799_s22, 0 }
   0x8   : > { %p156_p3 = scmp.eq.s32.totalorder %s492_s23, 1  ;;  %p493_p5 = scmp.ge.s32.totalorder %s739_s21, 1 }
   0x9   : > { %p808_p4 = por %p963_p1, %p42_p0  ;;  %p163_p7 = scmp.lt.s32.totalorder %s739_s21, 3 }
   0xa   : > { %p813_p6 = por %p156_p3, %p42_p0  ;;  %s741_s27 = smov [#allocation5]  }
   0xb   : > { %s967_s24 = scalar_select %p808_p4, 1, 0 }
   0xc   : > { %s968_s25 = scalar_select %p813_p6, 1, 0 }
   0xd   : > { %p818_p8 = pnand %p493_p5, %p163_p7  ;;  %s181_s28 = sshll.u32 %s741_s27, 4  ;;  %s182_s28 = int_to_ptr.vmem [resolvable:$true] %s181_s28 }
   0xe   : > { %s832_s30 = sadd.s32 1, %s739_s21   ;;  %s29_s6 = sadd.s32 1, %s735_s20 }
   0xf   : > { %s969_s26 = scalar_select %p818_p8, 1, 0 }
  0x10   : > { %p554_p9 = pneg %p818_p8  ;;  %s26_s7 = ssub.s32 %s739_s21, %s832_s30 }
  0x11   : > { %s628_s8 = scalar_lea.vmem %s182_s28, 1024  ;;  %p636_p5 = scmp.lt.s32.totalorder %s182_s28, %s182_s28 }
  0x12   : > { %p827_p11 = pnand %p554_p9, %p963_p1  ;;  %p629_p13 = scmp.ne.s32.totalorder %s182_s28, %s628_s8 }
  0x13   : > { %p637_p7 = scmp.lt.s32.totalorder %s628_s8, %s628_s8 }
  0x14   : > { %p619_p12 = pneg %p827_p11 }
  0x15   : > { %p638_p10 = por %p637_p7, %p636_p5 }
  0x16   : > { %p631_p0 = pnand %p629_p13, %p619_p12 }
  0x18   : > { %p632_p3 = pneg %p631_p0 }
  0x1a   : > { %p639_p2 = pnand %p638_p10, %p632_p3 }
  0x1c   : > { %642 = shalt.err (!%p639_p2)
}
  0x1d   : > { %s742_s9 = smov 64   ;;  %s743_s10 = smov 4  }
  0x1e   : > { %557 = dma.hbm_to_vmem [thread:$0]  (!%p827_p11), %s960_s3, 1024, %s182_s28, [#allocation6], %s742_s9, %s742_s9, %s743_s10  }
  0x1f   : > { %p27_p9 = scmp.eq.s32.totalorder %s26_s7, 0  ;;  %p36_p12 = scmp.ne.s32.totalorder %s735_s20, %s731_s19 }
  0x20   : > { %p37_p10 = scmp.eq.s32.totalorder %s739_s21, 0  ;;  %p567_p2 = scmp.lt.s32.totalorder %s739_s21, 2 }
  0x21   : > { %s849_s13 = scalar_select %p27_p9, %s735_s20, %s29_s6  }
  0x22   : > { %p38_p13 = por %p37_p10, %p36_p12  ;;  %p971_p0 = scmp.eq.s32.totalorder %s799_s22, 1 }
  0x23   : > { %s198_s15 = sand.u32 1, %s735_s20   ;;  %s497_s16 = sshll.u32 %s739_s21, 7 }
  0x24   : > { %p853_p3 = por %p971_p0, %p36_p12  ;;  %s496_s17 = sshll.u32 %s198_s15, 3 }
  0x25   : > { %s862_s29 = scalar_lea.hbm %s957_s0, %s497_s16  ;;  %s202_s28 = scalar_lea.vmem [#allocation2], %s496_s17 }
  0x26   : > { %s972_s14 = scalar_select %p853_p3, 1, 0 }
  0x27   : > { %s209_s6 = sshll.u32 %s202_s28, 4  ;;  %p864_p11 = pnand %p567_p2, %p38_p13  ;;  %s210_s6 = int_to_ptr.vmem [resolvable:$true] %s209_s6 }
  0x28   : > { %s199_s8 = scalar_lea.sflag [#allocation3], %s198_s15  ;;  %s643_s9 = scalar_lea.hbm %s862_s29, 128 }
  0x29   : > { %p644_p5 = scmp.ne.s32.totalorder %s862_s29, %s643_s9  ;;  %p645_p7 = pneg %p864_p11 }
  0x2a   : > { %s648_s12 = scalar_lea.hbm %s957_s0, 256  ;;  %p649_p10 = scmp.lt.s32.totalorder %s862_s29, %s957_s0 }
  0x2b   : > { %p646_p9 = pnand %p645_p7, %p644_p5  ;;  %p650_p2 = scmp.lt.s32.totalorder %s648_s12, %s643_s9 }
  0x2d   : > { %p647_p12 = pneg %p646_p9  ;;  %p651_p13 = por %p650_p2, %p649_p10 }
  0x2f   : > { %p652_p0 = pnand %p651_p13, %p647_p12 }
  0x31   : > { %655 = shalt.err (!%p652_p0)
}
  0x32   : > { %s656_s23 = scalar_lea.vmem %s210_s6, 128  ;;  %s744_s15 = smov [#allocation2]  }
  0x33   : > { %p657_p1 = scmp.ne.s32.totalorder %s210_s6, %s656_s23  ;;  %s661_s27 = sshll.u32 %s744_s15, 4  ;;  %s662_s27 = int_to_ptr.vmem [resolvable:$false] %s661_s27 }
  0x34   : > { %s663_s28 = scalar_lea.vmem %s662_s27, 256  ;;  %p664_p5 = scmp.lt.s32.totalorder %s210_s6, %s662_s27 }
  0x35   : > { %p659_p6 = pnand %p657_p1, %p645_p7  ;;  %p665_p9 = scmp.lt.s32.totalorder %s663_s28, %s656_s23 }
  0x37   : > { %p660_p3 = pneg %p659_p6  ;;  %p666_p4 = por %p665_p9, %p664_p5 }
  0x39   : > { %p667_p8 = pnand %p666_p4, %p660_p3 }
  0x3b   : > { %670 = shalt.err (!%p667_p8)
}
  0x3c   : > { %561 = dma.hbm_to_vmem [thread:$0]  (!%p864_p11), %s862_s29, 128, %s210_s6, %s199_s8  }
  0x3d   : > { %p974_p12 = scmp.ne.s32.totalorder %s969_s26, 0 }
  0x3e   : > { %s885_s9 = sand.u32 (!%p974_p12), 1, %s731_s19   ;;  %p975_p1 = scmp.ne.s32.totalorder (!%p974_p12), %s967_s24, 0 }
  0x3f   : > { %218 = sbr.rel (%p974_p12) target bundleno = 590 (0x24e), region = 40  ;;  %s499_s10 = sshll.u32 (!%p974_p12), %s885_s9, 3 }
  0x40   : > { %s221_s11 = scalar_lea.sflag (!%p974_p12), [#allocation3], %s885_s9  ;;  %s224_s12 = scalar_lea.vmem (!%p974_p12), [#allocation2], %s499_s10 }
  0x44   : > { %714 = dma.done.wait (%p975_p1), %s221_s11, 128  }
  0x45   : > { %716 = vsyncadd (%p975_p1), %s221_s11, 4294967168  ;;  %p976_p4 = scmp.eq.s32.totalorder %s799_s22, 0 }
  0x47   : > { %718 = dma.done.wait (%p976_p4), [#allocation6], 1024   ;;  %p977_p6 = pmov %p976_p4 }
  0x48   : > { %v256_v0 = vld [vmem:[%s224_s12] sm:$0xff]  ;;  %v745_v2 = vmov 0.0   ;;  %v609_v8 = vld [vmem:[#allocation5 + $0x28] sm:$0xff]   ;;  %v610_v9 = vld [vmem:[#allocation5 + $0x20] sm:$0xff]   ;;  %vm746_vm0 = vmmov 0   ;;  %s514_s16 = sshll.u32 %s799_s22, 7 }
  0x49   : > { %720 = vsyncadd (%p977_p6), [#allocation6], 4294966272  ;;  %257 = vadd.xlane.f32.xlu0 %v256_v0  ;;  %v607_v1 = vld [vmem:[#allocation5 + $0x38] sm:$0xff]   ;;  %526 = vmatprep.subr.bf16.mxu0 %v745_v2  ;;  %v608_v3 = vld [vmem:[#allocation5 + $0x30] sm:$0xff]   ;;  %s254_s17 = scalar_lea.vmem [#allocation7], %s499_s10  ;;  %s914_s28 = scalar_lea.hbm %s962_s5, %s514_s16 }
  0x4a   : > { %527 = vmatpush3.bf16.msra.mxu0 %v607_v1  ;;  %542 = vmatprep.mubr.msk.bf16.mxu0 %vm746_vm0, %v745_v2  ;;  %v611_v10 = vld [vmem:[#allocation5 + $0x18] sm:$0xff]   ;;  %v612_v11 = vld [vmem:[#allocation5 + $0x10] sm:$0xff]   ;;  %v613_v12 = vld [vmem:[#allocation5 + $0x8] sm:$0xff]   ;;  %s412_s23 = sshll.u32 %s254_s17, 4  ;;  %s399_s11 = scalar_lea.sflag [#allocation4], %s885_s9  ;;  %s916_s23 = int_to_ptr.vmem [resolvable:$true] %s412_s23 }
  0x4b   : > { %528 = vmatprep.subr.bf16.mxu0 %v745_v2  ;;  %v614_v13 = vld [vmem:[#allocation5] sm:$0xff]   ;;  %v502_v18 = vld [vmem:[%s958_s1] ss:$0 sm:$0xff]  ;;  %s671_s22 = scalar_lea.vmem %s916_s23, 128  ;;  %p978_p3 = scmp.ne.s32.totalorder %s972_s14, 0 }
  0x4c   : > { %v503_v20 = vld [vmem:[%s959_s2] ss:$0 sm:$0xff]  ;;  %p672_p8 = scmp.ne.s32.totalorder %s916_s23, %s671_s22  ;;  %s747_s10 = smov [#allocation7]  }
  0x4d   : > { %v504_v24 = vld [vmem:[%s961_s4] ss:$0 sm:$0xff]  ;;  %s675_s12 = sshll.u32 %s747_s10, 4  ;;  %s676_s12 = int_to_ptr.vmem [resolvable:$false] %s675_s12 }
  0x4e   : > { %529 = vmatpush3.bf16.msra.mxu0 %v608_v3  ;;  %p673_p11 = pnand %p672_p8, %p978_p3  ;;  %s677_s24 = scalar_lea.vmem %s676_s12, 256 }
  0x4f   : > { %530 = vmatprep.subr.bf16.mxu0 %v745_v2  ;;  %p678_p10 = scmp.lt.s32.totalorder %s916_s23, %s676_s12  ;;  %p679_p2 = scmp.lt.s32.totalorder %s677_s24, %s671_s22 }
  0x50   : > { %p674_p7 = pneg %p673_p11 }
  0x51   : > { %p680_p13 = por %p679_p2, %p678_p10 }
  0x52   : > { %531 = vmatpush3.bf16.msra.mxu0 %v609_v8 }
  0x53   : > { %532 = vmatprep.subr.bf16.mxu0 %v745_v2  ;;  %p681_p0 = pnand %p680_p13, %p674_p7 }
  0x56   : > { %533 = vmatpush3.bf16.msra.mxu0 %v610_v9 }
  0x57   : > { %534 = vmatprep.subr.bf16.mxu0 %v745_v2 }
  0x5a   : > { %535 = vmatpush3.bf16.msra.mxu0 %v611_v10 }
  0x5b   : > { %536 = vmatprep.subr.bf16.mxu0 %v745_v2 }
  0x5e   : > { %537 = vmatpush3.bf16.msra.mxu0 %v612_v11 }
  0x5f   : > { %538 = vmatprep.subr.bf16.mxu0 %v745_v2 }
  0x62   : > { %539 = vmatpush3.bf16.msra.mxu0 %v613_v12 }
  0x63   : > { %540 = vmatprep.subr.bf16.mxu0 %v745_v2 }
  0x66   : > { %541 = vmatpush3.bf16.msra.mxu0 %v614_v13 }
  0xd2   : > { %v258_v4 = vpop.xlane.xlu0 %257 }
  0xd3   : > { %v260_v5 = vmul.f32 0.0078125, %v258_v4 }
  0xd5   : > { %v261_v6 = vsub.f32 %v256_v0, %v260_v5 }
  0xd7   : > { %v262_v7 = vmul.f32 %v261_v6, %v261_v6 }
  0xd9   : > { %263 = vadd.xlane.f32.xlu0 %v262_v7 }
 0x162   : > { %v264_v14 = vpop.xlane.xlu0 %263 }
 0x163   : > { %v265_v15 = vmul.f32 0.0078125, %v264_v14 }
 0x165   : > { %v266_v16 = vadd.f32 1e-05, %v265_v15 }
 0x167   : > { %615 = vrsqrt.f32 %v266_v16 }
 0x174   : > { %v616_v17 = vpop.eup %615 }
 0x175   : > { %v268_v19 = vmul.f32 %v616_v17, %v261_v6 }
 0x177   : > { %v276_v21 = vmul.f32 %v502_v18, %v268_v19 }
 0x179   : > { %v284_v22 = vadd.f32 %v503_v20, %v276_v21 }
 0x17b   : > { %v285_v23 = vpack.c.bf16 %v284_v22, %v284_v22 }
 0x17d   : > { %543 = vmatmul.mubr.bf16.vlgmr.msra.gmra.mxu0 %v285_v23 }
 0x23d   : > { %v391_v25 = vpop.f32.mrf.mxu0 }
 0x23e   : > { %v392_v26 = vadd.f32 %v504_v24, %v391_v25 }
 0x23f   : > { %v544_v27 = vpop.f32.mrf.mxu0 }
 0x240   : > { %397 = vst [vmem:[%s254_s17] sm:$0xff] %v392_v26 }
 0x241   : > { %v394_v28 = vpop.f32.mrf.mxu0 }
 0x242   : > { %684 = shalt.err (!%p681_p0)
}
 0x243   : > { %s685_s26 = scalar_lea.hbm %s914_s28, 128  ;;  %s689_s6 = scalar_lea.hbm %s962_s5, 256 }
 0x244   : > { %p686_p5 = scmp.ne.s32.totalorder %s914_s28, %s685_s26  ;;  %p690_p1 = scmp.lt.s32.totalorder %s914_s28, %s962_s5 }
 0x245   : > { %p691_p4 = scmp.lt.s32.totalorder %s689_s6, %s685_s26 }
 0x246   : > { %p687_p9 = pnand %p686_p5, %p978_p3 }
 0x247   : > { %p692_p6 = por %p691_p4, %p690_p1 }
 0x248   : > { %p688_p12 = pneg %p687_p9 }
 0x24a   : > { %p693_p8 = pnand %p692_p6, %p688_p12 }
 0x24c   : > { %696 = shalt.err (!%p693_p8)
}
 0x24d   : > { %552 = dma.vmem_to_hbm [thread:$0]  (%p978_p3), %s916_s23, 128, %s914_s28, %s399_s11   ;;  %v545_v29 = vpop.f32.mrf.mxu0 }
 0x24e PF: > { %s424_s16 = sand.u32 1, %s727_s18   ;;  %p979_p11 = scmp.ne.s32.totalorder %s968_s25, 0 }
 0x24f   : > { %p980_p7 = scmp.ge.s32.totalorder %s739_s21, 2  ;;  %s425_s17 = scalar_lea.sflag [#allocation4], %s424_s16 }
 0x251   : > { %p563_p10 = pnand %p980_p7, %p979_p11 }
 0x253   : > { %p564_p2 = pneg %p563_p10 }
 0x255   : > { %722 = dma.done.wait (%p564_p2), %s425_s17, 128  }
 0x256   : > { %724 = vsyncadd (%p564_p2), %s425_s17, 4294967168  ;;  %p19_p13 = scmp.ge.s32.totalorder %s832_s30, 4   ;;  %s981_s18 = smov %s731_s19 }
 0x257   : > { %s982_s19 = smov %s735_s20  ;;  %s983_s20 = smov %s849_s13 }
 0x258   : > { %s984_s21 = smov %s832_s30  ;;  %21 = sbr.rel (!%p19_p13) target bundleno = 6 (0x6), region = 89 }
 0x25d   :  { %430 = vsyncpa [#allocation3], 1 }
 0x25e   :  { %432 = vsyncpa [#allocation3 + $0x1], 1 }
 0x25f   :  { %433 = vsyncpa [#allocation6], 1 }
 0x260   :  { %434 = vsyncpa [#allocation4], 1 }
 0x261   :  { %436 = vsyncpa [#allocation4 + $0x1], 1 }

</bundles_post_ra>
